<compile_context>
chip_gen: v7x
topology: tpu7x:2x2x1
jax: 0.10.0
libtpu: 0.0.40
codegen_flags: <defaults>
</compile_context>

<pallas_src>
import functools

import jax
import jax.numpy as jnp
from jax import lax
from jax.experimental import pallas as pl
from jax.experimental.pallas import tpu as pltpu

LANE_W = 512  # lane (last) block dim; multiple of 128


def _tpu_generation():
    """Best-effort TPU generation (4/5/6/7); 0 if unknown."""
    try:
        kind = jax.devices()[0].device_kind.lower()
    except Exception:
        return 0
    for g in (7, 6, 5, 4):
        if str(g) in kind:
            return g
    return 0


def _charbonnier_sum_jnp(x, y, m, eps):
    d = x.astype(jnp.float32) - y.astype(jnp.float32)
    l = jnp.sqrt(d * d + jnp.float32(eps))
    if m is not None:
        l = l * m.astype(jnp.float32)
    return jnp.sum(l)


def _charbonnier_kernel(*refs, eps, has_mask, needs_tail, block_rows, lane_w,
                        acc_rows, nblocks, steps_per_split, valid_elems):
    if has_mask:
        x_ref, y_ref, m_ref, out_ref = refs
    else:
        x_ref, y_ref, out_ref = refs
        m_ref = None

    split = pl.program_id(0)   # size-2 only on 2-TC chips (v7x); else size 1
    step = pl.program_id(1)    # reduction steps within a split

    # Output block index is constant along the 'arbitrary' step axis, so it
    # stays resident in VMEM and acts as this split's accumulator.  HBM
    # writeback is a single tiny (acc_rows, LANE_W) slab per split.
    @pl.when(step == 0)
    def _():
        out_ref[...] = jnp.zeros_like(out_ref)

    x = x_ref[...].astype(jnp.float32)
    y = y_ref[...].astype(jnp.float32)
    d = x - y
    loss = jnp.sqrt(d * d + jnp.float32(eps))
    if has_mask:
        loss = loss * m_ref[...].astype(jnp.float32)

    def fold(v):
        # Fold (block_rows, lane_w) into (acc_rows, lane_w) via sublane-group
        # adds along the major axis (pure VPU, no cross-lane work).
        if block_rows == acc_rows:
            return v
        groups = block_rows // acc_rows
        return jnp.sum(v.reshape(groups, acc_rows, lane_w), axis=0)

    if needs_tail:
        blk = split * steps_per_split + step  # logical (unclamped) block id

        # Interior blocks: no iota/compare/select at all.
        @pl.when(blk < nblocks - 1)
        def _():
            out_ref[...] += fold(loss)

        # Boundary block (may overrun the array) and phantom blocks (clamped
        # index_map when the grid oversubscribes): keep only valid elements.
        # Must stay a SELECT: 0 * NaN = NaN, so multiplicative masking would
        # silently break on garbage reads.
        @pl.when(blk >= nblocks - 1)
        def _():
            base = blk * (block_rows * lane_w)
            rem = jnp.int32(valid_elems) - base
            r = lax.broadcasted_iota(jnp.int32, (block_rows, lane_w), 0)
            c = lax.broadcasted_iota(jnp.int32, (block_rows, lane_w), 1)
            keep = (r * lane_w + c) < rem
            out_ref[...] += fold(jnp.where(keep, loss, jnp.float32(0.0)))
    else:
        out_ref[...] += fold(loss)


def charbonnier_loss(x, y, mask=None, eps=1e-6, mode=None,
                     _block_rows_cap=None, _num_splits=None):
    """Pallas implementation of CharbonnierLoss.forward."""
    x = jnp.asarray(x)
    y = jnp.asarray(y)
    N = x.shape[1]                     # channel dim, as in PyTorch x.size(1)
    numel = int(x.size)

    has_mask = mask is not None
    x_flat = x.reshape(-1)             # zero-copy reshape
    y_flat = y.reshape(-1)
    m_flat = None
    if has_mask:
        mask = jnp.asarray(mask)
        if mask.dtype == jnp.bool_:
            mask = mask.astype(jnp.bfloat16)   # 0/1 exact, 2-byte stream
        elif not jnp.issubdtype(mask.dtype, jnp.floating):
            mask = mask.astype(jnp.float32)
        if mask.shape != x.shape:
            # TODO(synk): stream the un-broadcast mask via its own BlockSpec /
            # index_map instead of materializing the broadcast (kept in its
            # narrow dtype to limit the extra HBM traffic).
            mask = jnp.broadcast_to(mask, x.shape)
        m_flat = mask.reshape(-1)

    rows = numel // LANE_W
    main = rows * LANE_W
    rem = numel - main

    # <LANE_W misaligned leftover handled with plain jnp (tiny); the kernel
    # only ever sees whole lane-dense rows -- no jnp.pad copies of the inputs.
    tail_sum = jnp.float32(0.0)
    if rem:
        tail_sum = _charbonnier_sum_jnp(
            x_flat[main:], y_flat[main:],
            m_flat[main:] if has_mask else None, eps)

    if rows == 0:
        total_sum = tail_sum
    else:
        if rem:
            # TODO(synk): the prefix slice may still copy; a fully copy-free
            # misaligned path needs manual DMA from the raw 1-D HBM array.
            x2 = x_flat[:main].reshape(rows, LANE_W)
            y2 = y_flat[:main].reshape(rows, LANE_W)
            m2 = m_flat[:main].reshape(rows, LANE_W) if has_mask else None
        else:
            x2 = x_flat.reshape(rows, LANE_W)      # zero-copy reshape
            y2 = y_flat.reshape(rows, LANE_W)
            m2 = m_flat.reshape(rows, LANE_W) if has_mask else None

        operands = [x2, y2] + ([m2] if has_mask else [])

        # Per-generation tiling: v7x wants bigger blocks (3.2 TB/s makes the
        # fixed per-step overhead dominant); v5e is already near roofline at
        # 1024-row f32 blocks.
        gen = _tpu_generation()
        if gen >= 7:
            vmem_limit = 48 * 1024 * 1024
            target_block_bytes = 4 << 20
        elif gen == 6:
            vmem_limit = 64 * 1024 * 1024
            target_block_bytes = 4 << 20
        else:  # v5e / v4 / unknown
            vmem_limit = 32 * 1024 * 1024
            target_block_bytes = 2 << 20

        max_itemsize = max(op.dtype.itemsize for op in operands)
        cap = max(256, (target_block_bytes // (LANE_W * max_itemsize)) // 32 * 32)
        if _block_rows_cap is not None:
            cap = int(_block_rows_cap)
        block_rows = min(cap, rows)
        nblocks = pl.cdiv(rows, block_rows)

        # 2-way split only on 2-TensorCore chips and only when useful;
        # on 1-TC chips it is pure overhead (phantom blocks, bigger slab).
        num_splits = 2 if (gen >= 7 and nblocks >= 2) else 1
        if _num_splits is not None:
            num_splits = max(1, min(int(_num_splits), int(nblocks)))
        steps_per_split = pl.cdiv(nblocks, num_splits)

        needs_tail = (rows % block_rows != 0) or \
                     (num_splits * steps_per_split != nblocks)
        acc_rows = 8 if block_rows % 8 == 0 else block_rows

        def in_map(split, step):
            blk = split * steps_per_split + step
            # Clamp phantom steps to a valid block; their contribution is
            # zeroed in-kernel by the count-based SELECT.
            return (jnp.minimum(blk, nblocks - 1), 0)

        in_specs = [pl.BlockSpec((block_rows, LANE_W), in_map) for _ in operands]
        out_spec = pl.BlockSpec((acc_rows, LANE_W), lambda split, step: (split, 0))
        out_shape = jax.ShapeDtypeStruct((num_splits * acc_rows, LANE_W),
                                         jnp.float32)

        kernel = functools.partial(
            _charbonnier_kernel,
            eps=float(eps), has_mask=has_mask, needs_tail=bool(needs_tail),
            block_rows=int(block_rows), lane_w=LANE_W, acc_rows=int(acc_rows),
            nblocks=int(nblocks), steps_per_split=int(steps_per_split),
            valid_elems=int(main))

        partials = pl.pallas_call(
            kernel,
            out_shape=out_shape,
            grid=(num_splits, steps_per_split),
            in_specs=in_specs,
            out_specs=out_spec,
            compiler_params=pltpu.CompilerParams(
                dimension_semantics=("parallel", "arbitrary"),
                vmem_limit_bytes=vmem_limit),
        )(*operands)

        total_sum = jnp.sum(partials) + tail_sum   # <= 16 x 512 f32 to reduce

    if mode == "sum":
        return total_sum / jnp.float32(N)
    return total_sum / jnp.float32(numel)


if __name__ == "__main__":
    key = jax.random.PRNGKey(0)
    kx, ky, km = jax.random.split(key, 3)

    eps = 1e-6

    def ref_loss(x, y, mask=None, mode=None):
        n = x.shape[1]
        d = x.astype(jnp.float32) - y.astype(jnp.float32)
        l = jnp.sqrt(d * d + eps)
        if mask is not None:
            l = l * mask.astype(jnp.float32)
        if mode == "sum":
            return jnp.sum(l) / n
        return jnp.mean(l)

    shape = (2, 4, 16, 16)            # NCHW
    x = jax.random.normal(kx, shape, dtype=jnp.float32)
    y = jax.random.normal(ky, shape, dtype=jnp.float32)
    mask = (jax.random.uniform(km, shape) > 0.3).astype(jnp.float32)

    # 1) mode=None (mean), no mask
    out = charbonnier_loss(x, y, eps=eps, mode=None)
    jax.block_until_ready(out)
    assert jnp.allclose(out, ref_loss(x, y), rtol=1e-5, atol=1e-6)

    # 2) mode='sum', with same-shape f32 mask (streamed natively)
    out = charbonnier_loss(x, y, mask=mask, eps=eps, mode="sum")
    jax.block_until_ready(out)
    assert jnp.allclose(out, ref_loss(x, y, mask, "sum"), rtol=1e-5, atol=1e-5)

    # 3) bf16 inputs streamed natively from HBM, upcast in-kernel
    xb = x.astype(jnp.bfloat16)
    yb = y.astype(jnp.bfloat16)
    out = charbonnier_loss(xb, yb, eps=eps, mode=None)
    jax.block_until_ready(out)
    assert jnp.allclose(out, ref_loss(xb, yb), rtol=1e-3, atol=1e-3)

    # 4) bool, lower-rank mask (kept narrow: bool -> bf16 before broadcast)
    mask_nhw = jax.random.uniform(km, (2, 1, 16, 16)) > 0.5
    out = charbonnier_loss(x, y, mask=mask_nhw, eps=eps, mode=None)
    jax.block_until_ready(out)
    ref4 = ref_loss(x, y, jnp.broadcast_to(mask_nhw, shape).astype(jnp.float32))
    assert jnp.allclose(out, ref4, rtol=1e-5, atol=1e-6)

    # 5) multi-block + ragged boundary + phantom block (forced small blocks
    #    and a forced 2-way split to exercise the tail/phantom path)
    shape5 = (2, 4, 36, 32)           # 9216 elems = 18 rows of 512
    x5 = jax.random.normal(kx, shape5, dtype=jnp.float32)
    y5 = jax.random.normal(ky, shape5, dtype=jnp.float32)
    out = charbonnier_loss(x5, y5, eps=eps, mode=None,
                           _block_rows_cap=8, _num_splits=2)
    jax.block_until_ready(out)
    assert jnp.allclose(out, ref_loss(x5, y5), rtol=1e-5, atol=1e-6)

    # 6) misaligned total (exercises the <LANE_W jnp remainder path, no pad)
    shape6 = (2, 3, 17, 7)            # 714 elems: 1 full row + 202 remainder
    x6 = jax.random.normal(kx, shape6, dtype=jnp.float32)
    y6 = jax.random.normal(ky, shape6, dtype=jnp.float32)
    out = charbonnier_loss(x6, y6, eps=eps, mode="sum")
    jax.block_until_ready(out)
    assert jnp.allclose(out, ref_loss(x6, y6, mode="sum"), rtol=1e-5, atol=1e-5)

    print("KERNEL_OK")
</pallas_src>

<mosaic_0001>
module attributes {stable_mosaic.version = 11 : i64} {
  func.func @_charbonnier_kernel(%arg0: i32, %arg1: i32, %arg2: memref<4x512xf32, #tpu.memory_space<vmem>>, %arg3: memref<4x512xf32, #tpu.memory_space<vmem>>, %arg4: memref<4x512xf32, #tpu.memory_space<vmem>>) attributes {dimension_semantics = [#tpu.dimension_semantics<parallel>, #tpu.dimension_semantics<arbitrary>], iteration_bounds = array<i64: 1, 1>, scalar_prefetch = 0 : i64, scratch_operands = 0 : i64, tpu.core_type = #tpu.core_type<tc>, window_params = [{transform_indices = @transform_0, window_bounds = array<i64: 4, 512>}, {transform_indices = @transform_1, window_bounds = array<i64: 4, 512>}, {transform_indices = @transform_2, window_bounds = array<i64: 4, 512>}]} {
    %c0_i32 = arith.constant 0 : i32
    %0 = arith.cmpi eq, %arg1, %c0_i32 : i32
    %1 = arith.extui %0 : i1 to i32
    %c0_i32_0 = arith.constant 0 : i32
    %2 = arith.cmpi ne, %1, %c0_i32_0 : i32
    scf.if %2 {
      %cst_8 = arith.constant 0.000000e+00 : f32
      %13 = vector.broadcast %cst_8 : f32 to vector<4x512xf32>
      %c0_9 = arith.constant 0 : index
      %c0_10 = arith.constant 0 : index
      %14 = vector.load %arg4[%c0_9, %c0_10] : memref<4x512xf32, #tpu.memory_space<vmem>>, vector<4x512xf32>
      tpu.vector_store %arg4[%c0_9, %c0_10], %13 {strides = array<i32>} : memref<4x512xf32, #tpu.memory_space<vmem>>, vector<4x512xf32>,
    } else {
    }
    %c0 = arith.constant 0 : index
    %c0_1 = arith.constant 0 : index
    %3 = vector.load %arg2[%c0, %c0_1] : memref<4x512xf32, #tpu.memory_space<vmem>>, vector<4x512xf32>
    %c0_2 = arith.constant 0 : index
    %c0_3 = arith.constant 0 : index
    %4 = vector.load %arg3[%c0_2, %c0_3] : memref<4x512xf32, #tpu.memory_space<vmem>>, vector<4x512xf32>
    %5 = arith.subf %3, %4 : vector<4x512xf32>
    %6 = arith.mulf %5, %5 : vector<4x512xf32>
    %cst = arith.constant 9.99999997E-7 : f32
    %7 = vector.broadcast %cst : f32 to vector<4x512xf32>
    %8 = arith.addf %6, %7 : vector<4x512xf32>
    %9 = math.sqrt %8 : vector<4x512xf32>
    %c0_4 = arith.constant 0 : index
    %c0_5 = arith.constant 0 : index
    %10 = vector.load %arg4[%c0_4, %c0_5] : memref<4x512xf32, #tpu.memory_space<vmem>>, vector<4x512xf32>
    %11 = arith.addf %10, %9 : vector<4x512xf32>
    %c0_6 = arith.constant 0 : index
    %c0_7 = arith.constant 0 : index
    %12 = vector.load %arg4[%c0_6, %c0_7] : memref<4x512xf32, #tpu.memory_space<vmem>>, vector<4x512xf32>
    tpu.vector_store %arg4[%c0_6, %c0_7], %11 {strides = array<i32>} : memref<4x512xf32, #tpu.memory_space<vmem>>, vector<4x512xf32>,
    return
  }
  func.func @transform_0(%arg0: i32, %arg1: i32) -> (i32, i32) {
    %c1_i32 = arith.constant 1 : i32
    %0 = arith.muli %arg0, %c1_i32 : i32
    %1 = arith.addi %0, %arg1 : i32
    %c0_i32 = arith.constant 0 : i32
    %2 = arith.minsi %1, %c0_i32 : i32
    %c0_i32_0 = arith.constant 0 : i32
    %c0_i32_1 = arith.constant 0 : i32
    return %2, %c0_i32_0 : i32, i32
  }
  func.func @transform_1(%arg0: i32, %arg1: i32) -> (i32, i32) {
    %c1_i32 = arith.constant 1 : i32
    %0 = arith.muli %arg0, %c1_i32 : i32
    %1 = arith.addi %0, %arg1 : i32
    %c0_i32 = arith.constant 0 : i32
    %2 = arith.minsi %1, %c0_i32 : i32
    %c0_i32_0 = arith.constant 0 : i32
    %c0_i32_1 = arith.constant 0 : i32
    return %2, %c0_i32_0 : i32, i32
  }
  func.func @transform_2(%arg0: i32, %arg1: i32) -> (i32, i32) {
    %c0_i32 = arith.constant 0 : i32
    %c0_i32_0 = arith.constant 0 : i32
    return %arg0, %c0_i32 : i32, i32
  }
}

</mosaic_0001>

<bundles_post_ra>
// kernel: tpu_custom_call.1
= control target key start
LH: loop header
LB: loop body
LE: loop exit
PB: predicated region body
PF: predicated region fallthrough
CT: control target
= control target key end

     0   :  { %7 = vsyncpa [#allocation3], 0  ;;  %s244_s0 = inlined_call_operand.hbm [shape: f32[4,512], index: 0, kind: input, shape index: {}]   ;;  %s245_s1 = inlined_call_operand.hbm [shape: f32[4,512], index: 1, kind: input, shape index: {}]   ;;  %s246_s2 = inlined_call_operand.hbm [shape: f32[4,512], index: 2, kind: output, shape index: {}]  }
   0x1   :  { %8 = vsyncpa [#allocation6], 0 }
   0x2   :  { %9 = vsyncpa [#allocation4], 0  ;;  %s190_s9 = smov [#allocation2]   ;;  %s191_s11 = smov [#allocation5]  }
   0x3   :  { %s22_s10 = sshll.u32 %s190_s9, 4  ;;  %s38_s12 = sshll.u32 %s191_s11, 4  ;;  %s23_s10 = int_to_ptr.vmem [resolvable:$true] %s22_s10  ;;  %s39_s12 = int_to_ptr.vmem [resolvable:$true] %s38_s12 }
   0x4   :  { %s118_s15 = scalar_lea.hbm %s244_s0, 256 }
   0x5   :  { %p119_p0 = scmp.ne.s32.totalorder %s244_s0, %s118_s15  ;;  %p122_p1 = scmp.lt.u32.totalorder %s118_s15, %s244_s0 }
   0x7   :  { %p124_p2 = pnand %p122_p1, %p119_p0 }
   0x9   :  { %127 = shalt.err (!%p124_p2)
}
   0xa   :  { %s128_s20 = scalar_lea.vmem %s23_s10, 256  ;;  %p133_p4 = scmp.lt.s32.totalorder %s23_s10, %s23_s10 }
   0xb   :  { %p129_p3 = scmp.ne.s32.totalorder %s23_s10, %s128_s20  ;;  %p134_p5 = scmp.lt.s32.totalorder %s128_s20, %s128_s20 }
   0xd   :  { %p135_p6 = por %p134_p5, %p133_p4 }
   0xf   :  { %p136_p7 = pnand %p135_p6, %p129_p3 }
  0x11   :  { %139 = shalt.err (!%p136_p7)
}
  0x12   :  { %25 = dma.hbm_to_vmem [thread:$0]  %s244_s0, 256, %s23_s10, [#allocation3]  }
  0x13   :  { %s140_s25 = scalar_lea.hbm %s245_s1, 256 }
  0x14   :  { %p141_p8 = scmp.ne.s32.totalorder %s245_s1, %s140_s25  ;;  %p144_p9 = scmp.lt.u32.totalorder %s140_s25, %s245_s1 }
  0x16   :  { %p146_p10 = pnand %p144_p9, %p141_p8 }
  0x18   :  { %149 = shalt.err (!%p146_p10)
}
  0x19   :  { %s150_s30 = scalar_lea.vmem %s39_s12, 256  ;;  %p155_p12 = scmp.lt.s32.totalorder %s39_s12, %s39_s12 }
  0x1a   :  { %p151_p11 = scmp.ne.s32.totalorder %s39_s12, %s150_s30  ;;  %p156_p13 = scmp.lt.s32.totalorder %s150_s30, %s150_s30 }
  0x1c   :  { %p157_p0 = por %p156_p13, %p155_p12 }
  0x1e   :  { %p158_p1 = pnand %p157_p0, %p151_p11 }
  0x20   :  { %161 = shalt.err (!%p158_p1)
}
  0x21   :  { %41 = dma.hbm_to_vmem [thread:$0]  %s245_s1, 256, %s39_s12, [#allocation6]  }
  0x22   :  { %184 = dma.done.wait [#allocation3], 256  }
  0x23   :  { %185 = vsyncadd [#allocation3], 4294967040 }
  0x24   :  { %186 = dma.done.wait [#allocation6], 256  }
  0x25   :  { %187 = vsyncadd [#allocation6], 4294967040  ;;  %v60_v0 = vld [vmem:[#allocation2] sm:$0xff]  ;;  %v62_v1 = vld [vmem:[#allocation5] sm:$0xff]  ;;  %s192_s1 = smov [#allocation7]  }
  0x26   :  { %v61_v2 = vld [vmem:[#allocation2 + $0x8] sm:$0xff]  ;;  %v64_v3 = vsub.f32 %v60_v0, %v62_v1  ;;  %v63_v4 = vld [vmem:[#allocation5 + $0x8] sm:$0xff]  ;;  %s96_s4 = sshll.u32 %s192_s1, 4  ;;  %s97_s4 = int_to_ptr.vmem [resolvable:$true] %s96_s4 }
  0x27   :  { %v65_v5 = vsub.f32 %v61_v2, %v63_v4  ;;  %s162_s5 = scalar_lea.vmem %s97_s4, 256  ;;  %p167_p3 = scmp.lt.s32.totalorder %s97_s4, %s97_s4 }
  0x28   :  { %v66_v6 = vmul.f32 %v64_v3, %v64_v3  ;;  %p163_p2 = scmp.ne.s32.totalorder %s97_s4, %s162_s5  ;;  %p168_p4 = scmp.lt.s32.totalorder %s162_s5, %s162_s5 }
  0x29   :  { %v67_v7 = vmul.f32 %v65_v5, %v65_v5 }
  0x2a   :  { %v68_v8 = vadd.f32 1e-06, %v66_v6  ;;  %p169_p5 = por %p168_p4, %p167_p3 }
  0x2b   :  { %v69_v9 = vadd.f32 1e-06, %v67_v7 }
  0x2c   :  { %114 = vrsqrt.f32 %v68_v8  ;;  %vm72_vm0 = vcmp.eq.f32.partialorder %v68_v8, inf  ;;  %v75_v11 = vand.u32 2147483648, %v68_v8  ;;  %vm74_vm1 = vcmp.eq.f32.partialorder %v68_v8, 0.0  ;;  %p170_p6 = pnand %p169_p5, %p163_p2 }
  0x2d   :  { %116 = vrsqrt.f32 %v69_v9  ;;  %vm79_vm2 = vcmp.eq.f32.partialorder %v69_v9, inf  ;;  %v82_v14 = vand.u32 2147483648, %v69_v9  ;;  %vm81_vm3 = vcmp.eq.f32.partialorder %v69_v9, 0.0 }
  0x36   :  { %v115_v10 = vpop.eup %114 }
  0x37   :  { %v117_v12 = vpop.eup %116  ;;  %v71_v13 = vmul.f32 %v115_v10, %v68_v8 }
  0x38   :  { %v78_v15 = vmul.f32 %v117_v12, %v69_v9 }
  0x39   :  { %v73_v16 = vsel %vm72_vm0, %v68_v8, %v71_v13 }
  0x3a   :  { %v76_v17 = vsel %vm74_vm1, %v75_v11, %v73_v16  ;;  %v80_v18 = vsel %vm79_vm2, %v69_v9, %v78_v15 }
  0x3b   :  { %v83_v19 = vsel %vm81_vm3, %v82_v14, %v80_v18  ;;  %88 = vst [vmem:[#allocation7] sm:$0xff] %v76_v17 }
  0x3c   :  { %89 = vst [vmem:[#allocation7 + $0x8] sm:$0xff] %v83_v19 }
  0x3d   :  { %173 = shalt.err (!%p170_p6)
}
  0x3e   :  { %s174_s8 = scalar_lea.hbm %s246_s2, 256 }
  0x3f   :  { %p175_p7 = scmp.ne.s32.totalorder %s246_s2, %s174_s8  ;;  %p178_p8 = scmp.lt.u32.totalorder %s174_s8, %s246_s2 }
  0x41   :  { %p180_p9 = pnand %p178_p8, %p175_p7 }
  0x43   :  { %183 = shalt.err (!%p180_p9)
}
  0x44   :  { %99 = dma.vmem_to_hbm [thread:$0]  %s97_s4, 256, %s246_s2, [#allocation4]  }
  0x45   :  { %188 = dma.done.wait [#allocation4], 256  }
  0x46   :  { %189 = vsyncadd [#allocation4], 4294967040 }
  0x47   :  { %103 = vsyncpa [#allocation3], 1 }
  0x48   :  { %104 = vsyncpa [#allocation6], 1 }
  0x49   :  { %105 = vsyncpa [#allocation4], 1 }

</bundles_post_ra>
